<compile_context>
chip_gen: v7x
topology: tpu7x:2x2x1
jax: 0.10.0
libtpu: 0.0.40
codegen_flags: <defaults>
</compile_context>

<pallas_src>
import jax
import jax.numpy as jnp
from jax.experimental import pallas as pl
from jax.experimental.pallas import tpu as pltpu


def _round_up(x: int, m: int) -> int:
    return ((x + m - 1) // m) * m


def _disc_mlp_kernel(x_ref, w1t_ref, b1_ref, w2t_ref, b2_ref, w3_ref, b3_ref,
                     logit_ref, reward_ref):
    """One batch tile of the fused 3-layer MLP, feature-major ([H, TILE_B]).

    x_ref     : [in_dim, TILE_B]  pipelined feature-major input tile
    w1t_ref   : [H, in_dim]       fc1 weight, transposed (VMEM resident)
    b1_ref    : [H, 1]            fc1 bias as a column (broadcast over lanes)
    w2t_ref   : [H, H]            fc2 weight, transposed (VMEM resident)
    b2_ref    : [H, 1]            fc2 bias column
    w3_ref    : [1, H]            fc3 weight as a row (VMEM resident)
    b3_ref    : [1, 1]            fc3 bias scalar (SMEM)
    logit_ref : [1, TILE_B]       lane-dense logits row for this tile
    reward_ref: [1, TILE_B]       lane-dense GAIL reward row for this tile
    """
    # h1^T = tanh(W1^T @ x^T + b1)   -> [H, TILE_B], lane-dense in the batch axis
    h1 = jnp.tanh(
        jnp.dot(w1t_ref[...], x_ref[...], preferred_element_type=jnp.float32)
        + b1_ref[...]
    )
    # h2^T = tanh(W2^T @ h1^T + b2)  -> [H, TILE_B]
    h2 = jnp.tanh(
        jnp.dot(w2t_ref[...], h1, preferred_element_type=jnp.float32)
        + b2_ref[...]
    )
    # logits^T = w3 @ h2^T + b3      -> [1, TILE_B] (lane-dense store)
    logits = (
        jnp.dot(w3_ref[...], h2, preferred_element_type=jnp.float32)
        + b3_ref[0, 0]
    )
    logit_ref[...] = logits
    # Fused epilogue (get_reward): -log(1 - sigmoid(logit) + 1e-8), all on EUP.
    reward_ref[...] = -jnp.log(1.0 - jax.nn.sigmoid(logits) + 1e-8)


def discriminator_forward(state, action, params, *, tile_b=2048):
    """state: [B, obs_dim], action: [B, act_dim]
       -> (logits [B,1] float32, reward [B,1] float32)."""
    w1t, b1, w2t, b2, w3, b3 = params
    state = state.astype(jnp.float32)
    action = action.astype(jnp.float32)

    B, obs_dim = state.shape
    act_dim = action.shape[1]
    in_dim = obs_dim + act_dim
    hidden = w2t.shape[0]

    # Batch tile: multiple of 128 so the lane-dense output stores are unmasked,
    # capped at the (rounded) batch size.  Per-step VMEM in the feature-major
    # layout is ~0.3 MiB at tile_b=2048 -> safe on v5e/v6e/v7x scoped defaults.
    tile_b = _round_up(max(128, min(tile_b, _round_up(B, 128))), 128)
    num_tiles = pl.cdiv(B, tile_b)
    b_pad = num_tiles * tile_b

    # Single feature-major input stream: xT = concat([state, action], 1)^T,
    # zero-padded on the batch (lane) axis to an exact number of tiles.
    x_t = jnp.concatenate([state, action], axis=1).T          # [in_dim, B]
    if b_pad != B:
        x_t = jnp.pad(x_t, ((0, 0), (0, b_pad - B)))

    def resident(shape):
        # Constant index_map -> block stays resident in VMEM (DMA'd once).
        return pl.BlockSpec(shape, lambda i: (0, 0))

    row_out_spec = pl.BlockSpec((1, tile_b), lambda i: (0, i))

    logits_row, reward_row = pl.pallas_call(
        _disc_mlp_kernel,
        out_shape=(
            jax.ShapeDtypeStruct((1, b_pad), jnp.float32),     # logits^T
            jax.ShapeDtypeStruct((1, b_pad), jnp.float32),     # reward^T
        ),
        grid=(num_tiles,),
        in_specs=[
            pl.BlockSpec((in_dim, tile_b), lambda i: (0, i)),  # xT tile (pipelined)
            resident((hidden, in_dim)),                        # W1^T
            resident((hidden, 1)),                             # b1 column
            resident((hidden, hidden)),                        # W2^T
            resident((hidden, 1)),                             # b2 column
            resident((1, hidden)),                             # w3 row
            pl.BlockSpec(memory_space=pltpu.MemorySpace.SMEM), # b3 scalar
        ],
        out_specs=(row_out_spec, row_out_spec),
        compiler_params=pltpu.CompilerParams(
            dimension_semantics=("parallel",),
            vmem_limit_bytes=16 * 1024 * 1024,
        ),
    )(x_t, w1t, b1, w2t, b2, w3, b3)

    logits = logits_row[0, :B].reshape(B, 1)
    reward = reward_row[0, :B].reshape(B, 1)
    return logits, reward


def init_params(key, obs_dim, act_dim, hidden_size):
    """nn.Linear-style U(-1/sqrt(fan_in), 1/sqrt(fan_in)) init, stored in the
    kernel's feature-major layout: W1^T [H, obs+act], b1 [H,1], W2^T [H,H],
    b2 [H,1], w3 row [1,H], b3 [1,1]."""
    def linear(key, fan_in, fan_out):
        kw, kb = jax.random.split(key)
        bound = 1.0 / jnp.sqrt(jnp.float32(fan_in))
        w = jax.random.uniform(kw, (fan_in, fan_out), jnp.float32, -bound, bound)
        b = jax.random.uniform(kb, (fan_out,), jnp.float32, -bound, bound)
        return w, b

    in_dim = obs_dim + act_dim
    k1, k2, k3 = jax.random.split(key, 3)
    w1, b1 = linear(k1, in_dim, hidden_size)
    w2, b2 = linear(k2, hidden_size, hidden_size)
    w3, b3 = linear(k3, hidden_size, 1)
    return (w1.T, b1.reshape(hidden_size, 1),
            w2.T, b2.reshape(hidden_size, 1),
            w3.T, b3.reshape(1, 1))


def reference_forward(state, action, params):
    w1t, b1, w2t, b2, w3, b3 = params
    x = jnp.concatenate([state, action], axis=1).astype(jnp.float32)
    h1 = jnp.tanh(x @ w1t.T + b1.T)
    h2 = jnp.tanh(h1 @ w2t.T + b2.T)
    logits = h2 @ w3.T + b3
    reward = -jnp.log(1.0 - jax.nn.sigmoid(logits) + 1e-8)
    return logits, reward


if __name__ == "__main__":
    # Small shapes consistent with the module: obs_dim=11, act_dim=3, hidden=32, batch=2
    obs_dim, act_dim, hidden_size, batch = 11, 3, 32, 2

    key = jax.random.PRNGKey(0)
    k_params, k_s, k_a, k_s2, k_a2 = jax.random.split(key, 5)

    params = init_params(k_params, obs_dim, act_dim, hidden_size)
    state = jax.random.normal(k_s, (batch, obs_dim), jnp.float32)
    action = jax.random.normal(k_a, (batch, act_dim), jnp.float32)

    logits, reward = discriminator_forward(state, action, params)
    jax.block_until_ready(logits)
    ref_logits, ref_reward = reference_forward(state, action, params)
    assert logits.shape == (batch, 1) and reward.shape == (batch, 1)
    assert jnp.allclose(logits, ref_logits, atol=1e-5, rtol=1e-5)
    assert jnp.allclose(reward, ref_reward, atol=1e-5, rtol=1e-5)

    # Larger, ragged batch to exercise the multi-tile grid / padding / lane-dense path.
    B2 = 300
    state2 = jax.random.normal(k_s2, (B2, obs_dim), jnp.float32)
    action2 = jax.random.normal(k_a2, (B2, act_dim), jnp.float32)
    logits2, reward2 = discriminator_forward(state2, action2, params, tile_b=128)
    jax.block_until_ready(logits2)
    ref_logits2, ref_reward2 = reference_forward(state2, action2, params)
    assert logits2.shape == (B2, 1) and reward2.shape == (B2, 1)
    assert jnp.allclose(logits2, ref_logits2, atol=1e-4, rtol=1e-4)
    assert jnp.allclose(reward2, ref_reward2, atol=1e-4, rtol=1e-4)

    print("KERNEL_OK")
</pallas_src>

<mosaic_0001>
module attributes {stable_mosaic.version = 11 : i64} {
  func.func @_disc_mlp_kernel(%arg0: i32, %arg1: memref<14x128xf32, #tpu.memory_space<vmem>>, %arg2: memref<32x14xf32, #tpu.memory_space<vmem>>, %arg3: memref<32x1xf32, #tpu.memory_space<vmem>>, %arg4: memref<32x32xf32, #tpu.memory_space<vmem>>, %arg5: memref<32x1xf32, #tpu.memory_space<vmem>>, %arg6: memref<1x32xf32, #tpu.memory_space<vmem>>, %arg7: memref<1x1xf32, #tpu.memory_space<smem>>, %arg8: memref<1x128xf32, #tpu.memory_space<vmem>>, %arg9: memref<1x128xf32, #tpu.memory_space<vmem>>) attributes {dimension_semantics = [#tpu.dimension_semantics<parallel>], iteration_bounds = array<i64: 1>, scalar_prefetch = 0 : i64, scratch_operands = 0 : i64, tpu.core_type = #tpu.core_type<tc>, window_params = [{transform_indices = @transform_0, window_bounds = array<i64: 14, 128>}, {pipeline_mode = #tpu.pipeline_mode<synchronous>, transform_indices = @transform_1, window_bounds = array<i64: 32, 14>}, {pipeline_mode = #tpu.pipeline_mode<synchronous>, transform_indices = @transform_2, window_bounds = array<i64: 32, 1>}, {pipeline_mode = #tpu.pipeline_mode<synchronous>, transform_indices = @transform_3, window_bounds = array<i64: 32, 32>}, {pipeline_mode = #tpu.pipeline_mode<synchronous>, transform_indices = @transform_4, window_bounds = array<i64: 32, 1>}, {pipeline_mode = #tpu.pipeline_mode<synchronous>, transform_indices = @transform_5, window_bounds = array<i64: 1, 32>}, {transform_indices = @transform_6, window_bounds = array<i64: 1, 1>}, {transform_indices = @transform_7, window_bounds = array<i64: 1, 128>}, {transform_indices = @transform_8, window_bounds = array<i64: 1, 128>}]} {
    %c0 = arith.constant 0 : index
    %c0_0 = arith.constant 0 : index
    %0 = vector.load %arg2[%c0, %c0_0] : memref<32x14xf32, #tpu.memory_space<vmem>>, vector<32x14xf32>
    %c0_1 = arith.constant 0 : index
    %c0_2 = arith.constant 0 : index
    %1 = vector.load %arg1[%c0_1, %c0_2] : memref<14x128xf32, #tpu.memory_space<vmem>>, vector<14x128xf32>
    %cst = arith.constant dense<0.000000e+00> : vector<32x128xf32>
    %2 = tpu.matmul %0, %1, %cst {dimension_numbers = #tpu.dot_dimension_numbers<[1], [0], [0], [1], [0, 0, 1, 1], [], []>} : vector<32x14xf32>, vector<14x128xf32>, vector<32x128xf32> -> vector<32x128xf32>
    %c0_3 = arith.constant 0 : index
    %c0_4 = arith.constant 0 : index
    %3 = vector.load %arg3[%c0_3, %c0_4] : memref<32x1xf32, #tpu.memory_space<vmem>>, vector<32x1xf32>
    %4 = vector.broadcast %3 : vector<32x1xf32> to vector<32x128xf32>
    %5 = arith.addf %2, %4 : vector<32x128xf32>
    %6 = math.tanh %5 : vector<32x128xf32>
    %c0_5 = arith.constant 0 : index
    %c0_6 = arith.constant 0 : index
    %7 = vector.load %arg4[%c0_5, %c0_6] : memref<32x32xf32, #tpu.memory_space<vmem>>, vector<32x32xf32>
    %cst_7 = arith.constant dense<0.000000e+00> : vector<32x128xf32>
    %8 = tpu.matmul %7, %6, %cst_7 {dimension_numbers = #tpu.dot_dimension_numbers<[1], [0], [0], [1], [0, 0, 1, 1], [], []>} : vector<32x32xf32>, vector<32x128xf32>, vector<32x128xf32> -> vector<32x128xf32>
    %c0_8 = arith.constant 0 : index
    %c0_9 = arith.constant 0 : index
    %9 = vector.load %arg5[%c0_8, %c0_9] : memref<32x1xf32, #tpu.memory_space<vmem>>, vector<32x1xf32>
    %10 = vector.broadcast %9 : vector<32x1xf32> to vector<32x128xf32>
    %11 = arith.addf %8, %10 : vector<32x128xf32>
    %12 = math.tanh %11 : vector<32x128xf32>
    %c0_10 = arith.constant 0 : index
    %c0_11 = arith.constant 0 : index
    %13 = vector.load %arg6[%c0_10, %c0_11] : memref<1x32xf32, #tpu.memory_space<vmem>>, vector<1x32xf32>
    %cst_12 = arith.constant dense<0.000000e+00> : vector<1x128xf32>
    %14 = tpu.matmul %13, %12, %cst_12 {dimension_numbers = #tpu.dot_dimension_numbers<[1], [0], [0], [1], [0, 0, 1, 1], [], []>} : vector<1x32xf32>, vector<32x128xf32>, vector<1x128xf32> -> vector<1x128xf32>
    %c0_13 = arith.constant 0 : index
    %c0_14 = arith.constant 0 : index
    %15 = memref.load %arg7[%c0_13, %c0_14] : memref<1x1xf32, #tpu.memory_space<smem>>
    %16 = vector.broadcast %15 : f32 to vector<1x128xf32>
    %17 = arith.addf %14, %16 : vector<1x128xf32>
    %c0_15 = arith.constant 0 : index
    %c0_16 = arith.constant 0 : index
    %18 = vector.load %arg8[%c0_15, %c0_16] : memref<1x128xf32, #tpu.memory_space<vmem>>, vector<1x128xf32>
    tpu.vector_store %arg8[%c0_15, %c0_16], %17 {strides = array<i32>} : memref<1x128xf32, #tpu.memory_space<vmem>>, vector<1x128xf32>,
    %19 = arith.negf %17 : vector<1x128xf32>
    %20 = math.exp %19 : vector<1x128xf32>
    %cst_17 = arith.constant 1.000000e+00 : f32
    %21 = vector.broadcast %cst_17 : f32 to vector<1x128xf32>
    %22 = arith.addf %21, %20 : vector<1x128xf32>
    %23 = arith.divf %21, %22 : vector<1x128xf32>
    %cst_18 = arith.constant 1.000000e+00 : f32
    %24 = vector.broadcast %cst_18 : f32 to vector<1x128xf32>
    %25 = arith.subf %24, %23 : vector<1x128xf32>
    %cst_19 = arith.constant 9.99999993E-9 : f32
    %26 = vector.broadcast %cst_19 : f32 to vector<1x128xf32>
    %27 = arith.addf %25, %26 : vector<1x128xf32>
    %28 = math.log %27 : vector<1x128xf32>
    %cst_20 = arith.constant 0.000000e+00 : f32
    %29 = vector.broadcast %cst_20 : f32 to vector<1x128xf32>
    %30 = arith.subf %29, %28 : vector<1x128xf32>
    %c0_21 = arith.constant 0 : index
    %c0_22 = arith.constant 0 : index
    %31 = vector.load %arg9[%c0_21, %c0_22] : memref<1x128xf32, #tpu.memory_space<vmem>>, vector<1x128xf32>
    tpu.vector_store %arg9[%c0_21, %c0_22], %30 {strides = array<i32>} : memref<1x128xf32, #tpu.memory_space<vmem>>, vector<1x128xf32>,
    return
  }
  func.func @transform_0(%arg0: i32) -> (i32, i32) {
    %c0_i32 = arith.constant 0 : i32
    %c0_i32_0 = arith.constant 0 : i32
    return %c0_i32, %arg0 : i32, i32
  }
  func.func @transform_1(%arg0: i32) -> (i32, i32) {
    %c0_i32 = arith.constant 0 : i32
    %c0_i32_0 = arith.constant 0 : i32
    %c0_i32_1 = arith.constant 0 : i32
    return %c0_i32, %c0_i32_0 : i32, i32
  }
  func.func @transform_2(%arg0: i32) -> (i32, i32) {
    %c0_i32 = arith.constant 0 : i32
    %c0_i32_0 = arith.constant 0 : i32
    %c0_i32_1 = arith.constant 0 : i32
    return %c0_i32, %c0_i32_0 : i32, i32
  }
  func.func @transform_3(%arg0: i32) -> (i32, i32) {
    %c0_i32 = arith.constant 0 : i32
    %c0_i32_0 = arith.constant 0 : i32
    %c0_i32_1 = arith.constant 0 : i32
    return %c0_i32, %c0_i32_0 : i32, i32
  }
  func.func @transform_4(%arg0: i32) -> (i32, i32) {
    %c0_i32 = arith.constant 0 : i32
    %c0_i32_0 = arith.constant 0 : i32
    %c0_i32_1 = arith.constant 0 : i32
    return %c0_i32, %c0_i32_0 : i32, i32
  }
  func.func @transform_5(%arg0: i32) -> (i32, i32) {
    %c0_i32 = arith.constant 0 : i32
    %c0_i32_0 = arith.constant 0 : i32
    %c0_i32_1 = arith.constant 0 : i32
    return %c0_i32, %c0_i32_0 : i32, i32
  }
  func.func @transform_6(%arg0: i32) -> (i32, i32) {
    %c0_i32 = arith.constant 0 : i32
    %c0_i32_0 = arith.constant 0 : i32
    %c0_i32_1 = arith.constant 0 : i32
    return %c0_i32, %c0_i32_0 : i32, i32
  }
  func.func @transform_7(%arg0: i32) -> (i32, i32) {
    %c0_i32 = arith.constant 0 : i32
    %c0_i32_0 = arith.constant 0 : i32
    return %c0_i32, %arg0 : i32, i32
  }
  func.func @transform_8(%arg0: i32) -> (i32, i32) {
    %c0_i32 = arith.constant 0 : i32
    %c0_i32_0 = arith.constant 0 : i32
    return %c0_i32, %arg0 : i32, i32
  }
}

</mosaic_0001>

<bundles_post_ra>
// kernel: tpu_custom_call.1
= control target key start
LH: loop header
LB: loop body
LE: loop exit
PB: predicated region body
PF: predicated region fallthrough
CT: control target
= control target key end

     0   :  { %15 = vsyncpa [#allocation4], 0  ;;  %vm74_vm0 = vcmask 1045504   ;;  %vm578_vm1 = vmmov 1   ;;  %vm61_vm3 = vcmask 113664   ;;  %v579_v4 = vmov 0   ;;  %s723_s0 = inlined_call_operand.vmem [shape: f32[14,128], index: 0, kind: input, shape index: {}]   ;;  %s724_s1 = inlined_call_operand.vmem [shape: f32[32,14], index: 1, kind: input, shape index: {}]   ;;  %s725_s2 = inlined_call_operand.vmem [shape: f32[32,1], index: 2, kind: input, shape index: {}]   ;;  %s726_s3 = inlined_call_operand.vmem [shape: f32[32,32], index: 3, kind: input, shape index: {}]   ;;  %s727_s4 = inlined_call_operand.vmem [shape: f32[32,1], index: 4, kind: input, shape index: {}]   ;;  %s728_s5 = inlined_call_operand.vmem [shape: f32[1,32], index: 5, kind: input, shape index: {}]   ;;  %s729_s6 = inlined_call_operand.<no memory space> [shape: f32[1,1], index: 6, kind: input, shape index: {}]   ;;  %s730_s7 = inlined_call_operand.hbm [shape: f32[1,128], index: 7, kind: output, shape index: {0}]   ;;  %s731_s8 = inlined_call_operand.hbm [shape: f32[1,128], index: 8, kind: output, shape index: {1}]  }
   0x1   :  { %v35_v0 = vld [vmem:[%s723_s0] sm:$0xff]  ;;  %v36_v1 = vld [vmem:[%s723_s0 + $0x8] sm:$0x3f]  ;;  %vm480_vm2 = vmpackc.low %vm74_vm0, %vm578_vm1  ;;  %506 = vset.pattern.permute.xlu0 %v579_v4  ;;  %507 = vset.pattern.permute.xlu1 %v579_v4 }
   0x2   :  { %v31_v2 = vld [vmem:[%s724_s1] sm:$0xff]  ;;  %v479_v3 = vpack.c.bf16 %v36_v1, %v35_v0  ;;  %v39_v6 = vld [vmem:[%s725_s2 + $0x10] sm:$0xff]  ;;  %v32_v7 = vld [vmem:[%s724_s1 + $0x8] sm:$0xff] }
   0x3   :  { %448 = vmatprep.mubr.msk.f32.mxu0 %vm61_vm3, %v31_v2  ;;  %v37_v5 = vld [vmem:[%s725_s2] sm:$0xff]  ;;  %v38_v8 = vld [vmem:[%s725_s2 + $0x8] sm:$0xff]  ;;  %v33_v9 = vld [vmem:[%s724_s1 + $0x10] sm:$0xff]  ;;  %53 = vperm.xlu1 %507, %v39_v6  }
   0x4   :  { %481 = vmatprep.subr.msk.bf16.mxu0 %vm480_vm2, %v479_v3  ;;  %43 = vperm.xlu0 %506, %v37_v5  }
   0x5   :  { %484 = vmatpush3.bf16.msk.msra.mxu0 %vm480_vm2, %v479_v3 }
   0x6   :  { %16 = vsyncpa [#allocation6], 0  ;;  %v40_v10 = vld [vmem:[%s725_s2 + $0x18] sm:$0xff]  ;;  %v171_v12 = vld [vmem:[%s727_s4] sm:$0xff]  ;;  %vm195_vm4 = vcmask 261120   ;;  %v580_v38 = vmov 0.0|0.0   ;;  %v299_v59 = vstv %s729_s6 }
   0x7   :  { %v34_v11 = vld [vmem:[%s724_s1 + $0x18] sm:$0xff]  ;;  %58 = vperm.xlu1 %507, %v40_v10   ;;  %v172_v13 = vld [vmem:[%s727_s4 + $0x8] sm:$0xff]  ;;  %v173_v14 = vld [vmem:[%s727_s4 + $0x10] sm:$0xff]  ;;  %493 = vmatprep.subr.bf16.mxu0 %v580_v38  ;;  %vm581_vm5 = vmmov 0   ;;  %v582_v39 = vmov 0.0   ;;  %s583_s17 = smov [#allocation3]  }
   0x8   :  { %449 = vmatmul.mubr.msk.f32.vlgmr.msra.gmra.mrb[0].mxu0 %vm61_vm3, %v32_v7  ;;  %48 = vperm.xlu0 %506, %v38_v8   ;;  %v174_v15 = vld [vmem:[%s727_s4 + $0x18] sm:$0xff]  ;;  %v167_v16 = vld [vmem:[%s726_s3] sm:$0xff]  ;;  %v168_v35 = vld [vmem:[%s726_s3 + $0x8] sm:$0xff]  ;;  %s392_s18 = sshll.u32 %s583_s17, 4  ;;  %s393_s18 = int_to_ptr.vmem [resolvable:$true] %s392_s18 }
   0x9   :  { %451 = vmatprep.mubr.msk.f32.mxu0 %vm61_vm3, %v33_v9  ;;  %462 = vmatprep.mubr.msk.f32.mxu1 %vm195_vm4, %v167_v16  ;;  %v169_v36 = vld [vmem:[%s726_s3 + $0x10] sm:$0xff]  ;;  %v170_v37 = vld [vmem:[%s726_s3 + $0x18] sm:$0xff]  ;;  %v297_v58 = vld [vmem:[%s728_s5] sm:$0x1]  ;;  %s530_s19 = scalar_lea.vmem %s393_s18, 16  ;;  %s534_s20 = scalar_lea.vmem %s393_s18, 32 }
   0xa   :  { %p531_p0 = scmp.ne.s32.totalorder %s393_s18, %s530_s19  ;;  %p535_p1 = scmp.lt.s32.totalorder %s393_s18, %s393_s18 }
   0xb   :  { %182 = vperm.xlu1 %507, %v172_v13   ;;  %p536_p2 = scmp.lt.s32.totalorder %s534_s20, %s530_s19 }
   0xc   :  { %452 = vmatmul.mubr.msk.f32.gmra.mrb[2].mxu0 %vm61_vm3, %v34_v11  ;;  %177 = vperm.xlu0 %506, %v171_v12  }
   0xd   :  { %476 = vmatprep.mubr.msk.f32.mxu0 %vm581_vm5, %v582_v39  ;;  %p537_p3 = por %p536_p2, %p535_p1 }
   0xf   :  { %192 = vperm.xlu1 %507, %v174_v15   ;;  %p538_p4 = pnand %p537_p3, %p531_p0 }
  0x10   :  { %187 = vperm.xlu0 %506, %v173_v14  }
  0x82   :  { %v54_v18 = vpop.permute.xlu1 %53 }
  0x83   :  { %v44_v17 = vpop.permute.xlu0 %43 }
  0x86   :  { %v59_v24 = vpop.permute.xlu1 %58 }
  0x87   :  { %v49_v19 = vpop.permute.xlu0 %48 }
  0x8a   :  { %v183_v40 = vpop.permute.xlu1 %182 }
  0x8b   :  { %v178_v41 = vpop.permute.xlu0 %177 }
  0x8e   :  { %v193_v46 = vpop.permute.xlu1 %192 }
  0x8f   :  { %v188_v48 = vpop.permute.xlu0 %187 }
  0xdb   :  { %v450_v20 = vpop.f32.mrb[0].mxu0 }
  0xdc   :  { %v150_v21 = vadd.f32 %v450_v20, %v49_v19  ;;  %v144_v22 = vpop.f32.mrb[1].mxu0 }
  0xdd   :  { %v145_v23 = vadd.f32 %v144_v22, %v44_v17 }
  0xde   :  { %508 = vtanh.f32 %v150_v21 }
  0xdf   :  { %510 = vtanh.f32 %v145_v23  ;;  %v453_v25 = vpop.f32.mrb[2].mxu0 }
  0xe0   :  { %v160_v26 = vadd.f32 %v453_v25, %v59_v24  ;;  %v154_v27 = vpop.f32.mrb[3].mxu0 }
  0xe1   :  { %v155_v28 = vadd.f32 %v154_v27, %v54_v18 }
  0xe2   :  { %512 = vtanh.f32 %v160_v26 }
  0xe3   :  { %514 = vtanh.f32 %v155_v28 }
  0xe8   :  { %v509_v29 = vpop.eup %508 }
  0xe9   :  { %v511_v30 = vpop.eup %510 }
  0xea   :  { %v485_v31 = vpack.c.bf16 %v509_v29, %v511_v30 }
  0xec   :  { %v513_v32 = vpop.eup %512  ;;  %486 = vmatprep.subr.bf16.mxu1 %v485_v31 }
  0xed   :  { %v515_v33 = vpop.eup %514  ;;  %488 = vmatpush3.bf16.msra.mxu1 %v485_v31 }
  0xee   :  { %v489_v34 = vpack.c.bf16 %v513_v32, %v515_v33 }
  0xf0   :  { %490 = vmatprep.subr.bf16.mxu1 %v489_v34 }
  0xf1   :  { %492 = vmatpush3.bf16.msra.mxu1 %v489_v34 }
  0xf4   :  { %463 = vmatmul.mubr.msk.f32.vlgmr.msra.gmra.mrb[0].mxu1 %vm195_vm4, %v168_v35 }
  0xf5   :  { %465 = vmatprep.mubr.msk.f32.mxu1 %vm195_vm4, %v169_v36 }
  0xf8   :  { %466 = vmatmul.mubr.msk.f32.gmra.mrb[2].mxu1 %vm195_vm4, %v170_v37 }
 0x1c7   :  { %v464_v42 = vpop.f32.mrb[0].mxu1 }
 0x1c8   :  { %v280_v43 = vadd.f32 %v464_v42, %v183_v40  ;;  %v274_v44 = vpop.f32.mrb[1].mxu1 }
 0x1c9   :  { %v275_v45 = vadd.f32 %v274_v44, %v178_v41 }
 0x1ca   :  { %516 = vtanh.f32 %v280_v43 }
 0x1cb   :  { %518 = vtanh.f32 %v275_v45  ;;  %v467_v47 = vpop.f32.mrb[2].mxu1 }
 0x1cc   :  { %v290_v49 = vadd.f32 %v467_v47, %v193_v46  ;;  %v284_v50 = vpop.f32.mrb[3].mxu1 }
 0x1cd   :  { %v285_v51 = vadd.f32 %v284_v50, %v188_v48 }
 0x1ce   :  { %520 = vtanh.f32 %v290_v49 }
 0x1cf   :  { %522 = vtanh.f32 %v285_v51 }
 0x1d4   :  { %v517_v52 = vpop.eup %516 }
 0x1d5   :  { %v519_v53 = vpop.eup %518 }
 0x1d6   :  { %v494_v54 = vpack.c.bf16 %v517_v52, %v519_v53 }
 0x1d8   :  { %v521_v55 = vpop.eup %520  ;;  %495 = vmatpush3.bf16.msra.mxu0 %v494_v54 }
 0x1d9   :  { %v523_v56 = vpop.eup %522  ;;  %496 = vmatprep.subr.bf16.mxu0 %v580_v38 }
 0x1da   :  { %v497_v57 = vpack.c.bf16 %v521_v55, %v523_v56 }
 0x1dc   :  { %498 = vmatpush3.bf16.msra.mxu0 %v497_v57 }
 0x1df   :  { %477 = vmatmul.mubr.msk.f32.vlgmr.msra.gmra.mrb[4].mxu0 %vm195_vm4, %v297_v58 }
 0x2b2   :  { %v369_v60 = vpop.f32.mrb[4].mxu0 }
 0x2b3   :  { %v370_v61 = vadd.f32 %v369_v60, %v299_v59  ;;  %v478_v62 = vpop.f32.mrb[5].mxu0 }
 0x2b5   :  { %v424_v63 = vmul.f32 -1.442695, %v370_v61  ;;  %373 = vst [vmem:[#allocation3] sm:$0x1] %v370_v61 }
 0x2b6   :  { %541 = shalt.err (!%p538_p4)
}
 0x2b7   :  { %s542_s6 = scalar_lea.hbm %s730_s7, 16 }
 0x2b8   :  { %p543_p5 = scmp.ne.s32.totalorder %s730_s7, %s542_s6  ;;  %p546_p6 = scmp.lt.u32.totalorder %s542_s6, %s730_s7 }
 0x2ba   :  { %p548_p7 = pnand %p546_p6, %p543_p5 }
 0x2bc   :  { %551 = shalt.err (!%p548_p7)
}
 0x2bd   :  { %395 = dma.vmem_to_hbm [thread:$0]  %s393_s18, 16, %s730_s7, [#allocation4]   ;;  %524 = vpow2.f32 %v424_v63 }
 0x2be   :  { %s584_s2 = smov [#allocation5]  }
 0x2bf   :  { %s402_s28 = sshll.u32 %s584_s2, 4  ;;  %s403_s28 = int_to_ptr.vmem [resolvable:$true] %s402_s28 }
 0x2c0   :  { %s552_s29 = scalar_lea.vmem %s403_s28, 16  ;;  %s556_s30 = scalar_lea.vmem %s403_s28, 32 }
 0x2c1   :  { %p553_p8 = scmp.ne.s32.totalorder %s403_s28, %s552_s29  ;;  %p557_p9 = scmp.lt.s32.totalorder %s403_s28, %s403_s28 }
 0x2c2   :  { %p558_p10 = scmp.lt.s32.totalorder %s556_s30, %s552_s29 }
 0x2c4   :  { %p559_p11 = por %p558_p10, %p557_p9 }
 0x2c6   :  { %p560_p12 = pnand %p559_p11, %p553_p8 }
 0x2c7   :  { %v525_v0 = vpop.eup %524 }
 0x2c8   :  { %v377_v1 = vadd.f32 1.0, %v525_v0 }
 0x2ca   :  { %526 = vrcp.f32 %v377_v1 }
 0x2d4   :  { %v527_v2 = vpop.eup %526 }
 0x2d5   :  { %v380_v3 = vsub.f32 1.0, %v527_v2 }
 0x2d7   :  { %v381_v4 = vadd.f32 1e-08, %v380_v3 }
 0x2d9   :  { %528 = vlog2.f32 %v381_v4 }
 0x2e3   :  { %v529_v5 = vpop.eup %528 }
 0x2e4   :  { %v383_v6 = vmul.f32 0.6931472, %v529_v5 }
 0x2e6   :  { %v384_v7 = vsub.f32 0.0, %v383_v6 }
 0x2e8   :  { %385 = vst [vmem:[#allocation5] sm:$0x1] %v384_v7 }
 0x2e9   :  { %563 = shalt.err (!%p560_p12)
}
 0x2ea   :  { %s564_s9 = scalar_lea.hbm %s731_s8, 16 }
 0x2eb   :  { %p565_p13 = scmp.ne.s32.totalorder %s731_s8, %s564_s9  ;;  %p568_p0 = scmp.lt.u32.totalorder %s564_s9, %s731_s8 }
 0x2ed   :  { %p570_p1 = pnand %p568_p0, %p565_p13 }
 0x2ef   :  { %573 = shalt.err (!%p570_p1)
}
 0x2f0   :  { %405 = dma.vmem_to_hbm [thread:$0]  %s403_s28, 16, %s731_s8, [#allocation6]  }
 0x2f1   :  { %574 = dma.done.wait [#allocation4], 16  }
 0x2f2   :  { %575 = vsyncadd [#allocation4], 4294967280 }
 0x2f3   :  { %576 = dma.done.wait [#allocation6], 16  }
 0x2f4   :  { %577 = vsyncadd [#allocation6], 4294967280 }
 0x2f5   :  { %412 = vsyncpa [#allocation4], 1 }
 0x2f6   :  { %413 = vsyncpa [#allocation6], 1 }

</bundles_post_ra>
